<compile_context>
chip_gen: v7x
topology: tpu7x:2x2x1
jax: 0.10.0
libtpu: 0.0.40
codegen_flags: <defaults>
</compile_context>

<pallas_src>
import math

import jax
import jax.numpy as jnp
from jax.experimental import pallas as pl
from jax.experimental.pallas import tpu as pltpu


def _round_up(x, m):
    return ((x + m - 1) // m) * m


# ----------------------------------------------------------------------------
# Kernel A: manual-DMA one-hot row gather + fused multi-layer GRU cell (1 step)
# ----------------------------------------------------------------------------
def make_gru_stack_kernel(L, Bp, Hp, n_sem):
    """Builds the kernel body; the operand list depends on whether L > 1."""
    has_rest = L > 1
    CH = min(Hp, 512)   # gate-math column chunk size (bounds live vreg pressure)

    def kernel(*refs):
        if has_rest:
            (idx_ref, wih0_hbm, bih0_ref, hidden_ref, whh0_ref, bhh0_ref,
             wfused_ref, bfused_ref, hnew_ref, gi0_ref, sem) = refs
        else:
            (idx_ref, wih0_hbm, bih0_ref, hidden_ref, whh0_ref, bhh0_ref,
             hnew_ref, gi0_ref, sem) = refs
            wfused_ref = bfused_ref = None

        # ---- one_hot(x) @ W_ih0^T == row gather W_ih0^T[idx[b]] --------------
        # W_ih0^T never enters VMEM whole: Bp single-row DMAs from HBM over a
        # ring of n_sem DMA semaphores (latency-bound, many copies in flight).
        pending = [None] * n_sem
        for b in range(Bp):
            slot = b % n_sem
            if pending[slot] is not None:
                pending[slot].wait()
            cp = pltpu.make_async_copy(
                wih0_hbm.at[pl.ds(idx_ref[b], 1), :],
                gi0_ref.at[pl.ds(b, 1), :],
                sem.at[slot])
            cp.start()
            pending[slot] = cp
        for slot in range(n_sem):
            if pending[slot] is not None:
                pending[slot].wait()

        gi0 = gi0_ref[...] + bih0_ref[...]                       # (Bp, 3Hp) f32

        # ---- layer 0: gh matmul + chunked gate math ---------------------------
        h_prev = hidden_ref[0]                                   # (Bp, Hp) f32
        gh = jnp.dot(h_prev.astype(jnp.bfloat16), whh0_ref[...],
                     preferred_element_type=jnp.float32) + bhh0_ref[...]
        for lo in range(0, Hp, CH):
            hi = min(lo + CH, Hp)
            r = jax.nn.sigmoid(gi0[:, lo:hi] + gh[:, lo:hi])
            z = jax.nn.sigmoid(gi0[:, Hp + lo:Hp + hi] + gh[:, Hp + lo:Hp + hi])
            n = jnp.tanh(gi0[:, 2 * Hp + lo:2 * Hp + hi]
                         + r * gh[:, 2 * Hp + lo:2 * Hp + hi])
            hnew_ref[0, :, lo:hi] = (1.0 - z) * n + z * h_prev[:, lo:hi]

        # ---- layers 1..L-1: one fused matmul per layer -------------------------
        # [x, h_prev] @ W_fused, W_fused (2Hp, 4Hp), column slabs:
        #   [gi_r+gh_r, gi_z+gh_z, gi_n, gh_n]
        for l in range(1, L):
            x = hnew_ref[l - 1]                                  # (Bp, Hp) f32
            h_prev = hidden_ref[l]
            xh = jnp.concatenate([x, h_prev], axis=-1).astype(jnp.bfloat16)
            g = jnp.dot(xh, wfused_ref[l - 1],
                        preferred_element_type=jnp.float32) + bfused_ref[l - 1]
            for lo in range(0, Hp, CH):
                hi = min(lo + CH, Hp)
                r = jax.nn.sigmoid(g[:, lo:hi])
                z = jax.nn.sigmoid(g[:, Hp + lo:Hp + hi])
                n = jnp.tanh(g[:, 2 * Hp + lo:2 * Hp + hi]
                             + r * g[:, 3 * Hp + lo:3 * Hp + hi])
                hnew_ref[l, :, lo:hi] = (1.0 - z) * n + z * h_prev[:, lo:hi]

    return kernel


def _gru_vmem_limit(L, Bp, Hp):
    """Scoped-VMEM request from actual block sizes (+2x buffering headroom)."""
    G3, G4 = 3 * Hp, 4 * Hp
    blocks = (G3 * 4                      # bih0
              + L * Bp * Hp * 4           # hidden in
              + Hp * G3 * 2               # whh0 (bf16)
              + G3 * 4                    # bhh0
              + L * Bp * Hp * 4)          # hidden out
    if L > 1:
        blocks += (L - 1) * (2 * Hp * G4 * 2 + G4 * 4)   # fused weights + bias
    scratch = Bp * G3 * 4
    temps = 4 * Bp * G4 * 4 + Bp * 2 * Hp * 4            # g / gate temporaries
    need = 2 * blocks + scratch + temps + (2 << 20)
    return int(min(max(need, 32 << 20), 100 << 20))


def gru_stack_call(idx, wih0_t, bih0, hidden_pad, whh0, bhh0, wfused, bfused):
    L, Bp, Hp = hidden_pad.shape
    G3 = 3 * Hp
    n_sem = min(8, Bp)
    kernel = make_gru_stack_kernel(L, Bp, Hp, n_sem)

    in_specs = [
        pl.BlockSpec(memory_space=pl.ANY),                        # W_ih0^T stays in HBM
        pl.BlockSpec((1, G3), lambda i, idx_r: (0, 0)),           # bih0
        pl.BlockSpec((L, Bp, Hp), lambda i, idx_r: (0, 0, 0)),    # hidden
        pl.BlockSpec((Hp, G3), lambda i, idx_r: (0, 0)),          # whh0
        pl.BlockSpec((1, G3), lambda i, idx_r: (0, 0)),           # bhh0
    ]
    args = [idx, wih0_t, bih0, hidden_pad, whh0, bhh0]
    if L > 1:
        in_specs += [
            pl.BlockSpec(tuple(wfused.shape), lambda i, idx_r: (0, 0, 0)),
            pl.BlockSpec(tuple(bfused.shape), lambda i, idx_r: (0, 0, 0)),
        ]
        args += [wfused, bfused]
    # TODO(synk): for very large L*Hp (v7x 64 MiB VMEM) stream per-layer weights with
    # an l-indexed BlockSpec / emit_pipeline instead of holding the stack resident.

    grid_spec = pltpu.PrefetchScalarGridSpec(
        num_scalar_prefetch=1,
        grid=(1,),                        # single step: gather + full GRU stack
        in_specs=in_specs,
        out_specs=pl.BlockSpec((L, Bp, Hp), lambda i, idx_r: (0, 0, 0)),
        scratch_shapes=[pltpu.VMEM((Bp, G3), jnp.float32),
                        pltpu.SemaphoreType.DMA((n_sem,))],
    )
    return pl.pallas_call(
        kernel,
        out_shape=jax.ShapeDtypeStruct((L, Bp, Hp), jnp.float32),
        grid_spec=grid_spec,
        compiler_params=pltpu.CompilerParams(
            dimension_semantics=("arbitrary",),
            vmem_limit_bytes=_gru_vmem_limit(L, Bp, Hp)),
    )(*args)


# ----------------------------------------------------------------------------
# Kernel B: logit = tanh(h_last @ W_h2o^T + b), tiled over the class dimension
# ----------------------------------------------------------------------------
def h2o_tanh_kernel(h_ref, w_ref, b_ref, out_ref):
    acc = jnp.dot(h_ref[...].astype(jnp.bfloat16), w_ref[...],
                  preferred_element_type=jnp.float32)
    out_ref[...] = jnp.tanh(acc + b_ref[...])


def h2o_tanh_call(hidden_full, w_pad, b_pad, tile_c):
    L, Bp, Hp = hidden_full.shape
    Cp = w_pad.shape[1]
    n_tiles = Cp // tile_c
    # W_h2o streams through VMEM in lane-dense C tiles.  3-deep buffering hides DMA
    # issue latency when the grid is long enough (biggest effect on v7x).
    if n_tiles >= 3:
        w_spec = pl.BlockSpec((Hp, tile_c), lambda j: (0, j),
                              pipeline_mode=pl.Buffered(3))
        n_bufs = 3
    else:
        w_spec = pl.BlockSpec((Hp, tile_c), lambda j: (0, j))
        n_bufs = 2
    need = (n_bufs * Hp * tile_c * 2
            + 2 * (Bp * Hp * 4 + tile_c * 4 + Bp * tile_c * 4) + (2 << 20))
    return pl.pallas_call(
        h2o_tanh_kernel,
        out_shape=jax.ShapeDtypeStruct((Bp, Cp), jnp.float32),
        grid=(n_tiles,),
        in_specs=[
            # last GRU layer's hidden, selected via a Squeezed leading dim (no
            # wrapper-side hidden_new[L-1] slice / extra HBM round trip).
            pl.BlockSpec((None, Bp, Hp), lambda j: (L - 1, 0, 0)),
            w_spec,
            pl.BlockSpec((1, tile_c), lambda j: (0, j)),
        ],
        out_specs=pl.BlockSpec((Bp, tile_c), lambda j: (0, j)),
        compiler_params=pltpu.CompilerParams(
            dimension_semantics=("parallel",),
            vmem_limit_bytes=int(min(max(need, 32 << 20), 100 << 20))),
    )(hidden_full, w_pad, b_pad)


# ----------------------------------------------------------------------------
# Module wrapper (parameter setup, padding / layout, glue)
# ----------------------------------------------------------------------------
class GRUPallas:
    LANE = 128
    SUBLANE = 8

    def __init__(self, input_size, if_embedding, embedding_size, hidden_size,
                 output_size, num_layers=1, dropout_hidden=0.5, dropout_input=0,
                 batch_size=50, key=jax.random.PRNGKey(0), c_tile=1024):
        # Eval-mode forward only.
        # TODO(synk): training-mode embedding/hidden dropout (bernoulli masks) not implemented.
        self.input_size = input_size
        self.hidden_size = hidden_size
        self.output_size = output_size
        self.num_layers = num_layers
        self.batch_size = batch_size

        H = hidden_size
        Hp = _round_up(H, self.LANE)
        self.Hp = Hp
        # Lane-dense h2o tiling: default 1024-wide C tiles (HBM-roofline friendly),
        # clipped down for small class counts so the grid stays non-degenerate.
        self.c_tile = min(c_tile, _round_up(output_size, self.LANE))
        self.Cp = _round_up(output_size, self.c_tile)

        k_gru = 1.0 / math.sqrt(hidden_size)
        keys = jax.random.split(key, 4 * num_layers + 2)
        self.raw_layers = []
        wfused_list, bfused_list = [], []
        for l in range(num_layers):
            in_l = input_size if l == 0 else hidden_size
            k0, k1, k2, k3 = keys[4 * l:4 * l + 4]
            w_ih = jax.random.uniform(k0, (3 * H, in_l), minval=-k_gru, maxval=k_gru,
                                      dtype=jnp.float32)
            w_hh = jax.random.uniform(k1, (3 * H, H), minval=-k_gru, maxval=k_gru,
                                      dtype=jnp.float32)
            b_ih = jax.random.uniform(k2, (3 * H,), minval=-k_gru, maxval=k_gru,
                                      dtype=jnp.float32)
            b_hh = jax.random.uniform(k3, (3 * H,), minval=-k_gru, maxval=k_gru,
                                      dtype=jnp.float32)
            self.raw_layers.append((w_ih, w_hh, b_ih, b_hh))

            if l == 0:
                # Layer-0 input weight stays fp32 in HBM: only row-gathered, never matmul'd.
                # TODO(synk): optionally store as bf16 to halve the per-row gather DMA.
                self.wih0_t = self._pack_gate_weight(w_ih, H, Hp, in_l, in_l)   # (C, 3Hp) f32
                self.bih0 = self._pack_gate_bias(b_ih, H, Hp)                   # (1, 3Hp) f32
                self.whh0 = self._pack_gate_weight(w_hh, H, Hp, H, Hp).astype(jnp.bfloat16)
                self.bhh0 = self._pack_gate_bias(b_hh, H, Hp)
            else:
                wfused_list.append(
                    self._pack_fused_weight(w_ih, w_hh, H, Hp).astype(jnp.bfloat16))
                bfused_list.append(self._pack_fused_bias(b_ih, b_hh, H, Hp))

        if num_layers > 1:
            self.wfused = jnp.stack(wfused_list, axis=0)    # (L-1, 2Hp, 4Hp) bf16
            self.bfused = jnp.stack(bfused_list, axis=0)    # (L-1, 1, 4Hp)  f32
        else:
            self.wfused = None
            self.bfused = None

        k_lin = 1.0 / math.sqrt(hidden_size)
        kw, kb = keys[-2], keys[-1]
        w_h2o = jax.random.uniform(kw, (output_size, H), minval=-k_lin, maxval=k_lin,
                                   dtype=jnp.float32)
        b_h2o = jax.random.uniform(kb, (output_size,), minval=-k_lin, maxval=k_lin,
                                   dtype=jnp.float32)
        self.raw_h2o = (w_h2o, b_h2o)
        wt = jnp.zeros((Hp, self.Cp), jnp.float32).at[:H, :output_size].set(w_h2o.T)
        self.w_h2o_t = wt.astype(jnp.bfloat16)                                   # (Hp, Cp) bf16
        self.b_h2o = jnp.zeros((1, self.Cp), jnp.float32).at[0, :output_size].set(b_h2o)

    @staticmethod
    def _pack_gate_weight(w, H, Hp, in_dim, in_pad):
        # w: (3H, in_dim) torch layout -> (in_pad, 3Hp) == W^T with each gate's H output
        # columns placed at a 128-lane-aligned offset g*Hp (zero padding elsewhere).
        out = jnp.zeros((in_pad, 3 * Hp), jnp.float32)
        for g in range(3):
            out = out.at[:in_dim, g * Hp:g * Hp + H].set(w[g * H:(g + 1) * H, :].T)
        return out

    @staticmethod
    def _pack_gate_bias(b, H, Hp):
        out = jnp.zeros((1, 3 * Hp), jnp.float32)
        for g in range(3):
            out = out.at[0, g * Hp:g * Hp + H].set(b[g * H:(g + 1) * H])
        return out

    @staticmethod
    def _pack_fused_weight(w_ih, w_hh, H, Hp):
        # Fused layer-l>0 weight: rows [0:Hp] take x, rows [Hp:2Hp] take h_prev.
        # Column slabs (each Hp wide): [gi_r+gh_r, gi_z+gh_z, gi_n, gh_n].
        out = jnp.zeros((2 * Hp, 4 * Hp), jnp.float32)
        for g in range(2):   # r, z: gi and gh summed by the single matmul
            out = out.at[:H, g * Hp:g * Hp + H].set(w_ih[g * H:(g + 1) * H, :].T)
            out = out.at[Hp:Hp + H, g * Hp:g * Hp + H].set(w_hh[g * H:(g + 1) * H, :].T)
        out = out.at[:H, 2 * Hp:2 * Hp + H].set(w_ih[2 * H:3 * H, :].T)          # gi_n
        out = out.at[Hp:Hp + H, 3 * Hp:3 * Hp + H].set(w_hh[2 * H:3 * H, :].T)   # gh_n
        return out

    @staticmethod
    def _pack_fused_bias(b_ih, b_hh, H, Hp):
        out = jnp.zeros((1, 4 * Hp), jnp.float32)
        out = out.at[0, 0:H].set(b_ih[0:H] + b_hh[0:H])
        out = out.at[0, Hp:Hp + H].set(b_ih[H:2 * H] + b_hh[H:2 * H])
        out = out.at[0, 2 * Hp:2 * Hp + H].set(b_ih[2 * H:3 * H])
        out = out.at[0, 3 * Hp:3 * Hp + H].set(b_hh[2 * H:3 * H])
        return out

    def init_hidden(self, batch_size=None):
        b = self.batch_size if batch_size is None else batch_size
        return jnp.zeros((self.num_layers, b, self.hidden_size), jnp.float32)

    def forward(self, inp, target, hidden):
        del target  # unused in the PyTorch forward as well
        # TODO(synk): for a recurrent loop, keep hidden in the padded (L, Bp, Hp) layout
        # between timesteps (and alias kernel-A in/out) to avoid these per-step
        # pad/slice ops; forward() keeps the original unpadded PyTorch API.
        L, H, Hp = self.num_layers, self.hidden_size, self.Hp
        B = inp.shape[0]
        Bp = _round_up(B, self.SUBLANE)

        idx = jnp.zeros((Bp,), jnp.int32).at[:B].set(inp.astype(jnp.int32))
        hid = jnp.zeros((L, Bp, Hp), jnp.float32).at[:, :B, :H].set(hidden)

        hidden_new = gru_stack_call(idx, self.wih0_t, self.bih0, hid,
                                    self.whh0, self.bhh0, self.wfused, self.bfused)
        logit = h2o_tanh_call(hidden_new, self.w_h2o_t, self.b_h2o, self.c_tile)
        return logit[:B, :self.output_size], hidden_new[:, :B, :H]


# ----------------------------------------------------------------------------
# Pure-JAX references for verification
# ----------------------------------------------------------------------------
def reference_forward_bf16(model, inp, hidden):
    """Mirrors the kernels' packed / bf16-matmul arithmetic (tight tolerance)."""
    L, H, Hp = model.num_layers, model.hidden_size, model.Hp
    B = inp.shape[0]
    h_pad = jnp.zeros((L, B, Hp), jnp.float32).at[:, :, :H].set(hidden)
    new_hidden = []

    # layer 0
    gi0 = model.wih0_t[inp] + model.bih0
    h_prev = h_pad[0]
    gh = jnp.dot(h_prev.astype(jnp.bfloat16), model.whh0,
                 preferred_element_type=jnp.float32) + model.bhh0
    r = jax.nn.sigmoid(gi0[:, :Hp] + gh[:, :Hp])
    z = jax.nn.sigmoid(gi0[:, Hp:2 * Hp] + gh[:, Hp:2 * Hp])
    n = jnp.tanh(gi0[:, 2 * Hp:] + r * gh[:, 2 * Hp:])
    x = (1.0 - z) * n + z * h_prev
    new_hidden.append(x[:, :H])

    # layers > 0 (fused weight layout)
    for l in range(1, L):
        h_prev = h_pad[l]
        xh = jnp.concatenate([x, h_prev], axis=-1).astype(jnp.bfloat16)
        g = jnp.dot(xh, model.wfused[l - 1],
                    preferred_element_type=jnp.float32) + model.bfused[l - 1]
        r = jax.nn.sigmoid(g[:, :Hp])
        z = jax.nn.sigmoid(g[:, Hp:2 * Hp])
        n = jnp.tanh(g[:, 2 * Hp:3 * Hp] + r * g[:, 3 * Hp:4 * Hp])
        x = (1.0 - z) * n + z * h_prev
        new_hidden.append(x[:, :H])

    logit = jnp.tanh(jnp.dot(x.astype(jnp.bfloat16), model.w_h2o_t,
                             preferred_element_type=jnp.float32) + model.b_h2o)
    return logit[:, :model.output_size], jnp.stack(new_hidden, axis=0)


def reference_forward_fp32(model, inp, hidden):
    """Straight fp32 re-implementation of the original PyTorch forward (one-hot matmul)."""
    x = jax.nn.one_hot(inp, model.input_size, dtype=jnp.float32)
    H = model.hidden_size
    new_hidden = []
    for l, (w_ih, w_hh, b_ih, b_hh) in enumerate(model.raw_layers):
        h = hidden[l]
        gi = x @ w_ih.T + b_ih
        gh = h @ w_hh.T + b_hh
        r = jax.nn.sigmoid(gi[:, :H] + gh[:, :H])
        z = jax.nn.sigmoid(gi[:, H:2 * H] + gh[:, H:2 * H])
        n = jnp.tanh(gi[:, 2 * H:] + r * gh[:, 2 * H:])
        h = (1.0 - z) * n + z * h
        new_hidden.append(h)
        x = h
    w_h2o, b_h2o = model.raw_h2o
    logit = jnp.tanh(x @ w_h2o.T + b_h2o)
    return logit, jnp.stack(new_hidden, axis=0)


if __name__ == "__main__":
    root = jax.random.PRNGKey(0)
    case_keys = jax.random.split(root, 3)

    def run_case(B, C, H, L, key):
        k_model, k_inp, k_tgt, k_hid = jax.random.split(key, 4)
        model = GRUPallas(input_size=C, if_embedding=False, embedding_size=0,
                          hidden_size=H, output_size=C, num_layers=L,
                          dropout_hidden=0.5, dropout_input=0.0,
                          batch_size=B, key=k_model)
        inp = jax.random.randint(k_inp, (B,), 0, C, dtype=jnp.int32)
        target = jax.random.randint(k_tgt, (B,), 0, C, dtype=jnp.int32)
        hidden0 = 0.1 * jax.random.normal(k_hid, (L, B, H), dtype=jnp.float32)

        logit, hidden1 = model.forward(inp, target, hidden0)
        logit = jax.block_until_ready(logit)
        hidden1 = jax.block_until_ready(hidden1)
        assert logit.shape == (B, C) and hidden1.shape == (L, B, H)

        ref_logit, ref_hidden = reference_forward_bf16(model, inp, hidden0)
        assert jnp.allclose(logit, ref_logit, atol=5e-3, rtol=5e-3), (
            f"logit mismatch (bf16 ref): {jnp.max(jnp.abs(logit - ref_logit))}")
        assert jnp.allclose(hidden1, ref_hidden, atol=5e-3, rtol=5e-3), (
            f"hidden mismatch (bf16 ref): {jnp.max(jnp.abs(hidden1 - ref_hidden))}")

        ref32_logit, ref32_hidden = reference_forward_fp32(model, inp, hidden0)
        assert jnp.allclose(logit, ref32_logit, atol=5e-2, rtol=5e-2), (
            f"logit mismatch (fp32 ref): {jnp.max(jnp.abs(logit - ref32_logit))}")
        assert jnp.allclose(hidden1, ref32_hidden, atol=5e-2, rtol=5e-2), (
            f"hidden mismatch (fp32 ref): {jnp.max(jnp.abs(hidden1 - ref32_hidden))}")

    run_case(B=8, C=64, H=32, L=1, key=case_keys[0])      # single-layer GRU4REC config
    run_case(B=8, C=64, H=32, L=2, key=case_keys[1])      # fused multi-layer path
    run_case(B=8, C=4096, H=640, L=2, key=case_keys[2])   # multi C-tile h2o + chunked gates
    print("KERNEL_OK")
</pallas_src>

<mosaic_0001>
module attributes {stable_mosaic.version = 11 : i64} {
  func.func @kernel(%arg0: i32, %arg1: memref<8xi32, #tpu.memory_space<smem>>, %arg2: memref<64x384xf32, #tpu.memory_space<any>>, %arg3: memref<1x384xf32, #tpu.memory_space<vmem>>, %arg4: memref<1x8x128xf32, #tpu.memory_space<vmem>>, %arg5: memref<128x384xbf16, #tpu.memory_space<vmem>>, %arg6: memref<1x384xf32, #tpu.memory_space<vmem>>, %arg7: memref<1x8x128xf32, #tpu.memory_space<vmem>>, %arg8: memref<8x384xf32, #tpu.memory_space<vmem>>, %arg9: memref<8x!tpu.dma_semaphore, #tpu.memory_space<semaphore_mem>>) attributes {dimension_semantics = [#tpu.dimension_semantics<arbitrary>], iteration_bounds = array<i64: 1>, scalar_prefetch = 1 : i64, scratch_operands = 2 : i64, tpu.core_type = #tpu.core_type<tc>, window_params = [{}, {pipeline_mode = #tpu.pipeline_mode<synchronous>, transform_indices = @transform_1, window_bounds = array<i64: 1, 384>}, {pipeline_mode = #tpu.pipeline_mode<synchronous>, transform_indices = @transform_2, window_bounds = array<i64: 1, 8, 128>}, {pipeline_mode = #tpu.pipeline_mode<synchronous>, transform_indices = @transform_3, window_bounds = array<i64: 128, 384>}, {pipeline_mode = #tpu.pipeline_mode<synchronous>, transform_indices = @transform_4, window_bounds = array<i64: 1, 384>}, {pipeline_mode = #tpu.pipeline_mode<synchronous>, transform_indices = @transform_5, window_bounds = array<i64: 1, 8, 128>}]} {
    %c0 = arith.constant 0 : index
    %0 = memref.load %arg1[%c0] : memref<8xi32, #tpu.memory_space<smem>>
    %c0_i32 = arith.constant 0 : i32
    %c0_i32_0 = arith.constant 0 : i32
    %1 = tpu.memref_slice %arg2[%0, %c0_i32_0] : memref<64x384xf32, #tpu.memory_space<any>> -> memref<1x384xf32, #tpu.memory_space<any>>
    %c0_i32_1 = arith.constant 0 : i32
    %c0_i32_2 = arith.constant 0 : i32
    %2 = tpu.memref_slice %arg8[%c0_i32_1, %c0_i32_2] : memref<8x384xf32, #tpu.memory_space<vmem>> -> memref<1x384xf32, #tpu.memory_space<vmem>>
    %3 = tpu.memref_slice %arg9[%c0_i32] : memref<8x!tpu.dma_semaphore, #tpu.memory_space<semaphore_mem>> -> memref<1x!tpu.dma_semaphore, #tpu.memory_space<semaphore_mem>>
    %4 = tpu.memref_squeeze %3 : memref<1x!tpu.dma_semaphore, #tpu.memory_space<semaphore_mem>> -> memref<!tpu.dma_semaphore, #tpu.memory_space<semaphore_mem>>
    tpu.enqueue_dma source(%1 : memref<1x384xf32, #tpu.memory_space<any>>) target(%2 : memref<1x384xf32, #tpu.memory_space<vmem>>) target_semaphore(%4 : memref<!tpu.dma_semaphore, #tpu.memory_space<semaphore_mem>>)
    %c1 = arith.constant 1 : index
    %5 = memref.load %arg1[%c1] : memref<8xi32, #tpu.memory_space<smem>>
    %c1_i32 = arith.constant 1 : i32
    %c0_i32_3 = arith.constant 0 : i32
    %6 = tpu.memref_slice %arg2[%5, %c0_i32_3] : memref<64x384xf32, #tpu.memory_space<any>> -> memref<1x384xf32, #tpu.memory_space<any>>
    %c1_i32_4 = arith.constant 1 : i32
    %c0_i32_5 = arith.constant 0 : i32
    %7 = tpu.memref_slice %arg8[%c1_i32_4, %c0_i32_5] : memref<8x384xf32, #tpu.memory_space<vmem>> -> memref<1x384xf32, #tpu.memory_space<vmem>>
    %8 = tpu.memref_slice %arg9[%c1_i32] : memref<8x!tpu.dma_semaphore, #tpu.memory_space<semaphore_mem>> -> memref<1x!tpu.dma_semaphore, #tpu.memory_space<semaphore_mem>>
    %9 = tpu.memref_squeeze %8 : memref<1x!tpu.dma_semaphore, #tpu.memory_space<semaphore_mem>> -> memref<!tpu.dma_semaphore, #tpu.memory_space<semaphore_mem>>
    tpu.enqueue_dma source(%6 : memref<1x384xf32, #tpu.memory_space<any>>) target(%7 : memref<1x384xf32, #tpu.memory_space<vmem>>) target_semaphore(%9 : memref<!tpu.dma_semaphore, #tpu.memory_space<semaphore_mem>>)
    %c2 = arith.constant 2 : index
    %10 = memref.load %arg1[%c2] : memref<8xi32, #tpu.memory_space<smem>>
    %c2_i32 = arith.constant 2 : i32
    %c0_i32_6 = arith.constant 0 : i32
    %11 = tpu.memref_slice %arg2[%10, %c0_i32_6] : memref<64x384xf32, #tpu.memory_space<any>> -> memref<1x384xf32, #tpu.memory_space<any>>
    %c2_i32_7 = arith.constant 2 : i32
    %c0_i32_8 = arith.constant 0 : i32
    %12 = tpu.memref_slice %arg8[%c2_i32_7, %c0_i32_8] : memref<8x384xf32, #tpu.memory_space<vmem>> -> memref<1x384xf32, #tpu.memory_space<vmem>>
    %13 = tpu.memref_slice %arg9[%c2_i32] : memref<8x!tpu.dma_semaphore, #tpu.memory_space<semaphore_mem>> -> memref<1x!tpu.dma_semaphore, #tpu.memory_space<semaphore_mem>>
    %14 = tpu.memref_squeeze %13 : memref<1x!tpu.dma_semaphore, #tpu.memory_space<semaphore_mem>> -> memref<!tpu.dma_semaphore, #tpu.memory_space<semaphore_mem>>
    tpu.enqueue_dma source(%11 : memref<1x384xf32, #tpu.memory_space<any>>) target(%12 : memref<1x384xf32, #tpu.memory_space<vmem>>) target_semaphore(%14 : memref<!tpu.dma_semaphore, #tpu.memory_space<semaphore_mem>>)
    %c3 = arith.constant 3 : index
    %15 = memref.load %arg1[%c3] : memref<8xi32, #tpu.memory_space<smem>>
    %c3_i32 = arith.constant 3 : i32
    %c0_i32_9 = arith.constant 0 : i32
    %16 = tpu.memref_slice %arg2[%15, %c0_i32_9] : memref<64x384xf32, #tpu.memory_space<any>> -> memref<1x384xf32, #tpu.memory_space<any>>
    %c3_i32_10 = arith.constant 3 : i32
    %c0_i32_11 = arith.constant 0 : i32
    %17 = tpu.memref_slice %arg8[%c3_i32_10, %c0_i32_11] : memref<8x384xf32, #tpu.memory_space<vmem>> -> memref<1x384xf32, #tpu.memory_space<vmem>>
    %18 = tpu.memref_slice %arg9[%c3_i32] : memref<8x!tpu.dma_semaphore, #tpu.memory_space<semaphore_mem>> -> memref<1x!tpu.dma_semaphore, #tpu.memory_space<semaphore_mem>>
    %19 = tpu.memref_squeeze %18 : memref<1x!tpu.dma_semaphore, #tpu.memory_space<semaphore_mem>> -> memref<!tpu.dma_semaphore, #tpu.memory_space<semaphore_mem>>
    tpu.enqueue_dma source(%16 : memref<1x384xf32, #tpu.memory_space<any>>) target(%17 : memref<1x384xf32, #tpu.memory_space<vmem>>) target_semaphore(%19 : memref<!tpu.dma_semaphore, #tpu.memory_space<semaphore_mem>>)
    %c4 = arith.constant 4 : index
    %20 = memref.load %arg1[%c4] : memref<8xi32, #tpu.memory_space<smem>>
    %c4_i32 = arith.constant 4 : i32
    %c0_i32_12 = arith.constant 0 : i32
    %21 = tpu.memref_slice %arg2[%20, %c0_i32_12] : memref<64x384xf32, #tpu.memory_space<any>> -> memref<1x384xf32, #tpu.memory_space<any>>
    %c4_i32_13 = arith.constant 4 : i32
    %c0_i32_14 = arith.constant 0 : i32
    %22 = tpu.memref_slice %arg8[%c4_i32_13, %c0_i32_14] : memref<8x384xf32, #tpu.memory_space<vmem>> -> memref<1x384xf32, #tpu.memory_space<vmem>>
    %23 = tpu.memref_slice %arg9[%c4_i32] : memref<8x!tpu.dma_semaphore, #tpu.memory_space<semaphore_mem>> -> memref<1x!tpu.dma_semaphore, #tpu.memory_space<semaphore_mem>>
    %24 = tpu.memref_squeeze %23 : memref<1x!tpu.dma_semaphore, #tpu.memory_space<semaphore_mem>> -> memref<!tpu.dma_semaphore, #tpu.memory_space<semaphore_mem>>
    tpu.enqueue_dma source(%21 : memref<1x384xf32, #tpu.memory_space<any>>) target(%22 : memref<1x384xf32, #tpu.memory_space<vmem>>) target_semaphore(%24 : memref<!tpu.dma_semaphore, #tpu.memory_space<semaphore_mem>>)
    %c5 = arith.constant 5 : index
    %25 = memref.load %arg1[%c5] : memref<8xi32, #tpu.memory_space<smem>>
    %c5_i32 = arith.constant 5 : i32
    %c0_i32_15 = arith.constant 0 : i32
    %26 = tpu.memref_slice %arg2[%25, %c0_i32_15] : memref<64x384xf32, #tpu.memory_space<any>> -> memref<1x384xf32, #tpu.memory_space<any>>
    %c5_i32_16 = arith.constant 5 : i32
    %c0_i32_17 = arith.constant 0 : i32
    %27 = tpu.memref_slice %arg8[%c5_i32_16, %c0_i32_17] : memref<8x384xf32, #tpu.memory_space<vmem>> -> memref<1x384xf32, #tpu.memory_space<vmem>>
    %28 = tpu.memref_slice %arg9[%c5_i32] : memref<8x!tpu.dma_semaphore, #tpu.memory_space<semaphore_mem>> -> memref<1x!tpu.dma_semaphore, #tpu.memory_space<semaphore_mem>>
    %29 = tpu.memref_squeeze %28 : memref<1x!tpu.dma_semaphore, #tpu.memory_space<semaphore_mem>> -> memref<!tpu.dma_semaphore, #tpu.memory_space<semaphore_mem>>
    tpu.enqueue_dma source(%26 : memref<1x384xf32, #tpu.memory_space<any>>) target(%27 : memref<1x384xf32, #tpu.memory_space<vmem>>) target_semaphore(%29 : memref<!tpu.dma_semaphore, #tpu.memory_space<semaphore_mem>>)
    %c6 = arith.constant 6 : index
    %30 = memref.load %arg1[%c6] : memref<8xi32, #tpu.memory_space<smem>>
    %c6_i32 = arith.constant 6 : i32
    %c0_i32_18 = arith.constant 0 : i32
    %31 = tpu.memref_slice %arg2[%30, %c0_i32_18] : memref<64x384xf32, #tpu.memory_space<any>> -> memref<1x384xf32, #tpu.memory_space<any>>
    %c6_i32_19 = arith.constant 6 : i32
    %c0_i32_20 = arith.constant 0 : i32
    %32 = tpu.memref_slice %arg8[%c6_i32_19, %c0_i32_20] : memref<8x384xf32, #tpu.memory_space<vmem>> -> memref<1x384xf32, #tpu.memory_space<vmem>>
    %33 = tpu.memref_slice %arg9[%c6_i32] : memref<8x!tpu.dma_semaphore, #tpu.memory_space<semaphore_mem>> -> memref<1x!tpu.dma_semaphore, #tpu.memory_space<semaphore_mem>>
    %34 = tpu.memref_squeeze %33 : memref<1x!tpu.dma_semaphore, #tpu.memory_space<semaphore_mem>> -> memref<!tpu.dma_semaphore, #tpu.memory_space<semaphore_mem>>
    tpu.enqueue_dma source(%31 : memref<1x384xf32, #tpu.memory_space<any>>) target(%32 : memref<1x384xf32, #tpu.memory_space<vmem>>) target_semaphore(%34 : memref<!tpu.dma_semaphore, #tpu.memory_space<semaphore_mem>>)
    %c7 = arith.constant 7 : index
    %35 = memref.load %arg1[%c7] : memref<8xi32, #tpu.memory_space<smem>>
    %c7_i32 = arith.constant 7 : i32
    %c0_i32_21 = arith.constant 0 : i32
    %36 = tpu.memref_slice %arg2[%35, %c0_i32_21] : memref<64x384xf32, #tpu.memory_space<any>> -> memref<1x384xf32, #tpu.memory_space<any>>
    %c7_i32_22 = arith.constant 7 : i32
    %c0_i32_23 = arith.constant 0 : i32
    %37 = tpu.memref_slice %arg8[%c7_i32_22, %c0_i32_23] : memref<8x384xf32, #tpu.memory_space<vmem>> -> memref<1x384xf32, #tpu.memory_space<vmem>>
    %38 = tpu.memref_slice %arg9[%c7_i32] : memref<8x!tpu.dma_semaphore, #tpu.memory_space<semaphore_mem>> -> memref<1x!tpu.dma_semaphore, #tpu.memory_space<semaphore_mem>>
    %39 = tpu.memref_squeeze %38 : memref<1x!tpu.dma_semaphore, #tpu.memory_space<semaphore_mem>> -> memref<!tpu.dma_semaphore, #tpu.memory_space<semaphore_mem>>
    tpu.enqueue_dma source(%36 : memref<1x384xf32, #tpu.memory_space<any>>) target(%37 : memref<1x384xf32, #tpu.memory_space<vmem>>) target_semaphore(%39 : memref<!tpu.dma_semaphore, #tpu.memory_space<semaphore_mem>>)
    %c0_i32_24 = arith.constant 0 : i32
    %c0_i32_25 = arith.constant 0 : i32
    %40 = tpu.memref_slice %arg2[%0, %c0_i32_25] : memref<64x384xf32, #tpu.memory_space<any>> -> memref<1x384xf32, #tpu.memory_space<any>>
    %c0_i32_26 = arith.constant 0 : i32
    %c0_i32_27 = arith.constant 0 : i32
    %41 = tpu.memref_slice %arg8[%c0_i32_26, %c0_i32_27] : memref<8x384xf32, #tpu.memory_space<vmem>> -> memref<1x384xf32, #tpu.memory_space<vmem>>
    %42 = tpu.memref_slice %arg9[%c0_i32_24] : memref<8x!tpu.dma_semaphore, #tpu.memory_space<semaphore_mem>> -> memref<1x!tpu.dma_semaphore, #tpu.memory_space<semaphore_mem>>
    %43 = tpu.memref_squeeze %42 : memref<1x!tpu.dma_semaphore, #tpu.memory_space<semaphore_mem>> -> memref<!tpu.dma_semaphore, #tpu.memory_space<semaphore_mem>>
    tpu.wait_dma2 semaphore(%43 : memref<!tpu.dma_semaphore, #tpu.memory_space<semaphore_mem>>) src(%40 : memref<1x384xf32, #tpu.memory_space<any>>) dst(%41 : memref<1x384xf32, #tpu.memory_space<vmem>>)
    %c1_i32_28 = arith.constant 1 : i32
    %c0_i32_29 = arith.constant 0 : i32
    %44 = tpu.memref_slice %arg2[%5, %c0_i32_29] : memref<64x384xf32, #tpu.memory_space<any>> -> memref<1x384xf32, #tpu.memory_space<any>>
    %c1_i32_30 = arith.constant 1 : i32
    %c0_i32_31 = arith.constant 0 : i32
    %45 = tpu.memref_slice %arg8[%c1_i32_30, %c0_i32_31] : memref<8x384xf32, #tpu.memory_space<vmem>> -> memref<1x384xf32, #tpu.memory_space<vmem>>
    %46 = tpu.memref_slice %arg9[%c1_i32_28] : memref<8x!tpu.dma_semaphore, #tpu.memory_space<semaphore_mem>> -> memref<1x!tpu.dma_semaphore, #tpu.memory_space<semaphore_mem>>
    %47 = tpu.memref_squeeze %46 : memref<1x!tpu.dma_semaphore, #tpu.memory_space<semaphore_mem>> -> memref<!tpu.dma_semaphore, #tpu.memory_space<semaphore_mem>>
    tpu.wait_dma2 semaphore(%47 : memref<!tpu.dma_semaphore, #tpu.memory_space<semaphore_mem>>) src(%44 : memref<1x384xf32, #tpu.memory_space<any>>) dst(%45 : memref<1x384xf32, #tpu.memory_space<vmem>>)
    %c2_i32_32 = arith.constant 2 : i32
    %c0_i32_33 = arith.constant 0 : i32
    %48 = tpu.memref_slice %arg2[%10, %c0_i32_33] : memref<64x384xf32, #tpu.memory_space<any>> -> memref<1x384xf32, #tpu.memory_space<any>>
    %c2_i32_34 = arith.constant 2 : i32
    %c0_i32_35 = arith.constant 0 : i32
    %49 = tpu.memref_slice %arg8[%c2_i32_34, %c0_i32_35] : memref<8x384xf32, #tpu.memory_space<vmem>> -> memref<1x384xf32, #tpu.memory_space<vmem>>
    %50 = tpu.memref_slice %arg9[%c2_i32_32] : memref<8x!tpu.dma_semaphore, #tpu.memory_space<semaphore_mem>> -> memref<1x!tpu.dma_semaphore, #tpu.memory_space<semaphore_mem>>
    %51 = tpu.memref_squeeze %50 : memref<1x!tpu.dma_semaphore, #tpu.memory_space<semaphore_mem>> -> memref<!tpu.dma_semaphore, #tpu.memory_space<semaphore_mem>>
    tpu.wait_dma2 semaphore(%51 : memref<!tpu.dma_semaphore, #tpu.memory_space<semaphore_mem>>) src(%48 : memref<1x384xf32, #tpu.memory_space<any>>) dst(%49 : memref<1x384xf32, #tpu.memory_space<vmem>>)
    %c3_i32_36 = arith.constant 3 : i32
    %c0_i32_37 = arith.constant 0 : i32
    %52 = tpu.memref_slice %arg2[%15, %c0_i32_37] : memref<64x384xf32, #tpu.memory_space<any>> -> memref<1x384xf32, #tpu.memory_space<any>>
    %c3_i32_38 = arith.constant 3 : i32
    %c0_i32_39 = arith.constant 0 : i32
    %53 = tpu.memref_slice %arg8[%c3_i32_38, %c0_i32_39] : memref<8x384xf32, #tpu.memory_space<vmem>> -> memref<1x384xf32, #tpu.memory_space<vmem>>
    %54 = tpu.memref_slice %arg9[%c3_i32_36] : memref<8x!tpu.dma_semaphore, #tpu.memory_space<semaphore_mem>> -> memref<1x!tpu.dma_semaphore, #tpu.memory_space<semaphore_mem>>
    %55 = tpu.memref_squeeze %54 : memref<1x!tpu.dma_semaphore, #tpu.memory_space<semaphore_mem>> -> memref<!tpu.dma_semaphore, #tpu.memory_space<semaphore_mem>>
    tpu.wait_dma2 semaphore(%55 : memref<!tpu.dma_semaphore, #tpu.memory_space<semaphore_mem>>) src(%52 : memref<1x384xf32, #tpu.memory_space<any>>) dst(%53 : memref<1x384xf32, #tpu.memory_space<vmem>>)
    %c4_i32_40 = arith.constant 4 : i32
    %c0_i32_41 = arith.constant 0 : i32
    %56 = tpu.memref_slice %arg2[%20, %c0_i32_41] : memref<64x384xf32, #tpu.memory_space<any>> -> memref<1x384xf32, #tpu.memory_space<any>>
    %c4_i32_42 = arith.constant 4 : i32
    %c0_i32_43 = arith.constant 0 : i32
    %57 = tpu.memref_slice %arg8[%c4_i32_42, %c0_i32_43] : memref<8x384xf32, #tpu.memory_space<vmem>> -> memref<1x384xf32, #tpu.memory_space<vmem>>
    %58 = tpu.memref_slice %arg9[%c4_i32_40] : memref<8x!tpu.dma_semaphore, #tpu.memory_space<semaphore_mem>> -> memref<1x!tpu.dma_semaphore, #tpu.memory_space<semaphore_mem>>
    %59 = tpu.memref_squeeze %58 : memref<1x!tpu.dma_semaphore, #tpu.memory_space<semaphore_mem>> -> memref<!tpu.dma_semaphore, #tpu.memory_space<semaphore_mem>>
    tpu.wait_dma2 semaphore(%59 : memref<!tpu.dma_semaphore, #tpu.memory_space<semaphore_mem>>) src(%56 : memref<1x384xf32, #tpu.memory_space<any>>) dst(%57 : memref<1x384xf32, #tpu.memory_space<vmem>>)
    %c5_i32_44 = arith.constant 5 : i32
    %c0_i32_45 = arith.constant 0 : i32
    %60 = tpu.memref_slice %arg2[%25, %c0_i32_45] : memref<64x384xf32, #tpu.memory_space<any>> -> memref<1x384xf32, #tpu.memory_space<any>>
    %c5_i32_46 = arith.constant 5 : i32
    %c0_i32_47 = arith.constant 0 : i32
    %61 = tpu.memref_slice %arg8[%c5_i32_46, %c0_i32_47] : memref<8x384xf32, #tpu.memory_space<vmem>> -> memref<1x384xf32, #tpu.memory_space<vmem>>
    %62 = tpu.memref_slice %arg9[%c5_i32_44] : memref<8x!tpu.dma_semaphore, #tpu.memory_space<semaphore_mem>> -> memref<1x!tpu.dma_semaphore, #tpu.memory_space<semaphore_mem>>
    %63 = tpu.memref_squeeze %62 : memref<1x!tpu.dma_semaphore, #tpu.memory_space<semaphore_mem>> -> memref<!tpu.dma_semaphore, #tpu.memory_space<semaphore_mem>>
    tpu.wait_dma2 semaphore(%63 : memref<!tpu.dma_semaphore, #tpu.memory_space<semaphore_mem>>) src(%60 : memref<1x384xf32, #tpu.memory_space<any>>) dst(%61 : memref<1x384xf32, #tpu.memory_space<vmem>>)
    %c6_i32_48 = arith.constant 6 : i32
    %c0_i32_49 = arith.constant 0 : i32
    %64 = tpu.memref_slice %arg2[%30, %c0_i32_49] : memref<64x384xf32, #tpu.memory_space<any>> -> memref<1x384xf32, #tpu.memory_space<any>>
    %c6_i32_50 = arith.constant 6 : i32
    %c0_i32_51 = arith.constant 0 : i32
    %65 = tpu.memref_slice %arg8[%c6_i32_50, %c0_i32_51] : memref<8x384xf32, #tpu.memory_space<vmem>> -> memref<1x384xf32, #tpu.memory_space<vmem>>
    %66 = tpu.memref_slice %arg9[%c6_i32_48] : memref<8x!tpu.dma_semaphore, #tpu.memory_space<semaphore_mem>> -> memref<1x!tpu.dma_semaphore, #tpu.memory_space<semaphore_mem>>
    %67 = tpu.memref_squeeze %66 : memref<1x!tpu.dma_semaphore, #tpu.memory_space<semaphore_mem>> -> memref<!tpu.dma_semaphore, #tpu.memory_space<semaphore_mem>>
    tpu.wait_dma2 semaphore(%67 : memref<!tpu.dma_semaphore, #tpu.memory_space<semaphore_mem>>) src(%64 : memref<1x384xf32, #tpu.memory_space<any>>) dst(%65 : memref<1x384xf32, #tpu.memory_space<vmem>>)
    %c7_i32_52 = arith.constant 7 : i32
    %c0_i32_53 = arith.constant 0 : i32
    %68 = tpu.memref_slice %arg2[%35, %c0_i32_53] : memref<64x384xf32, #tpu.memory_space<any>> -> memref<1x384xf32, #tpu.memory_space<any>>
    %c7_i32_54 = arith.constant 7 : i32
    %c0_i32_55 = arith.constant 0 : i32
    %69 = tpu.memref_slice %arg8[%c7_i32_54, %c0_i32_55] : memref<8x384xf32, #tpu.memory_space<vmem>> -> memref<1x384xf32, #tpu.memory_space<vmem>>
    %70 = tpu.memref_slice %arg9[%c7_i32_52] : memref<8x!tpu.dma_semaphore, #tpu.memory_space<semaphore_mem>> -> memref<1x!tpu.dma_semaphore, #tpu.memory_space<semaphore_mem>>
    %71 = tpu.memref_squeeze %70 : memref<1x!tpu.dma_semaphore, #tpu.memory_space<semaphore_mem>> -> memref<!tpu.dma_semaphore, #tpu.memory_space<semaphore_mem>>
    tpu.wait_dma2 semaphore(%71 : memref<!tpu.dma_semaphore, #tpu.memory_space<semaphore_mem>>) src(%68 : memref<1x384xf32, #tpu.memory_space<any>>) dst(%69 : memref<1x384xf32, #tpu.memory_space<vmem>>)
    %c0_56 = arith.constant 0 : index
    %c0_57 = arith.constant 0 : index
    %72 = vector.load %arg8[%c0_56, %c0_57] : memref<8x384xf32, #tpu.memory_space<vmem>>, vector<8x384xf32>
    %c0_58 = arith.constant 0 : index
    %c0_59 = arith.constant 0 : index
    %73 = vector.load %arg3[%c0_58, %c0_59] : memref<1x384xf32, #tpu.memory_space<vmem>>, vector<1x384xf32>
    %74 = vector.broadcast %73 : vector<1x384xf32> to vector<8x384xf32>
    %75 = arith.addf %72, %74 : vector<8x384xf32>
    %c0_60 = arith.constant 0 : index
    %c0_61 = arith.constant 0 : index
    %c0_62 = arith.constant 0 : index
    %76 = vector.load %arg4[%c0_60, %c0_61, %c0_62] : memref<1x8x128xf32, #tpu.memory_space<vmem>>, vector<1x8x128xf32>
    %77 = vector.shape_cast %76 : vector<1x8x128xf32> to vector<8x128xf32>
    %78 = arith.truncf %77 : vector<8x128xf32> to vector<8x128xbf16>
    %c0_63 = arith.constant 0 : index
    %c0_64 = arith.constant 0 : index
    %79 = vector.load %arg5[%c0_63, %c0_64] : memref<128x384xbf16, #tpu.memory_space<vmem>>, vector<128x384xbf16>
    %cst = arith.constant dense<0.000000e+00> : vector<8x384xf32>
    %80 = tpu.matmul %78, %79, %cst {dimension_numbers = #tpu.dot_dimension_numbers<[1], [0], [0], [1], [0, 0, 1, 1], [], []>} : vector<8x128xbf16>, vector<128x384xbf16>, vector<8x384xf32> -> vector<8x384xf32>
    %c0_65 = arith.constant 0 : index
    %c0_66 = arith.constant 0 : index
    %81 = vector.load %arg6[%c0_65, %c0_66] : memref<1x384xf32, #tpu.memory_space<vmem>>, vector<1x384xf32>
    %82 = vector.broadcast %81 : vector<1x384xf32> to vector<8x384xf32>
    %83 = arith.addf %80, %82 : vector<8x384xf32>
    %84 = vector.extract_strided_slice %75 {offsets = [0, 0], sizes = [8, 128], strides = [1, 1]} : vector<8x384xf32> to vector<8x128xf32>
    %85 = vector.extract_strided_slice %83 {offsets = [0, 0], sizes = [8, 128], strides = [1, 1]} : vector<8x384xf32> to vector<8x128xf32>
    %86 = arith.addf %84, %85 : vector<8x128xf32>
    %87 = arith.negf %86 : vector<8x128xf32>
    %88 = math.exp %87 : vector<8x128xf32>
    %cst_67 = arith.constant 1.000000e+00 : f32
    %89 = vector.broadcast %cst_67 : f32 to vector<8x128xf32>
    %90 = arith.addf %89, %88 : vector<8x128xf32>
    %91 = arith.divf %89, %90 : vector<8x128xf32>
    %92 = vector.extract_strided_slice %75 {offsets = [0, 128], sizes = [8, 128], strides = [1, 1]} : vector<8x384xf32> to vector<8x128xf32>
    %93 = vector.extract_strided_slice %83 {offsets = [0, 128], sizes = [8, 128], strides = [1, 1]} : vector<8x384xf32> to vector<8x128xf32>
    %94 = arith.addf %92, %93 : vector<8x128xf32>
    %95 = arith.negf %94 : vector<8x128xf32>
    %96 = math.exp %95 : vector<8x128xf32>
    %cst_68 = arith.constant 1.000000e+00 : f32
    %97 = vector.broadcast %cst_68 : f32 to vector<8x128xf32>
    %98 = arith.addf %97, %96 : vector<8x128xf32>
    %99 = arith.divf %97, %98 : vector<8x128xf32>
    %100 = vector.extract_strided_slice %75 {offsets = [0, 256], sizes = [8, 128], strides = [1, 1]} : vector<8x384xf32> to vector<8x128xf32>
    %101 = vector.extract_strided_slice %83 {offsets = [0, 256], sizes = [8, 128], strides = [1, 1]} : vector<8x384xf32> to vector<8x128xf32>
    %102 = arith.mulf %91, %101 : vector<8x128xf32>
    %103 = arith.addf %100, %102 : vector<8x128xf32>
    %104 = math.tanh %103 : vector<8x128xf32>
    %cst_69 = arith.constant 1.000000e+00 : f32
    %105 = vector.broadcast %cst_69 : f32 to vector<8x128xf32>
    %106 = arith.subf %105, %99 : vector<8x128xf32>
    %107 = arith.mulf %106, %104 : vector<8x128xf32>
    %108 = arith.mulf %99, %77 : vector<8x128xf32>
    %109 = arith.addf %107, %108 : vector<8x128xf32>
    %c0_70 = arith.constant 0 : index
    %c0_71 = arith.constant 0 : index
    %c0_72 = arith.constant 0 : index
    %110 = vector.load %arg7[%c0_70, %c0_71, %c0_72] : memref<1x8x128xf32, #tpu.memory_space<vmem>>, vector<1x8x128xf32>
    %111 = vector.shape_cast %110 : vector<1x8x128xf32> to vector<8x128xf32>
    %112 = vector.shape_cast %109 : vector<8x128xf32> to vector<1x8x128xf32>
    tpu.vector_store %arg7[%c0_70, %c0_71, %c0_72], %112 {strides = array<i32>} : memref<1x8x128xf32, #tpu.memory_space<vmem>>, vector<1x8x128xf32>,
    return
  }
  func.func @transform_1(%arg0: i32, %arg1: memref<8xi32, #tpu.memory_space<smem>>) -> (i32, i32) {
    %c0_i32 = arith.constant 0 : i32
    %c0_i32_0 = arith.constant 0 : i32
    %c0_i32_1 = arith.constant 0 : i32
    return %c0_i32, %c0_i32_0 : i32, i32
  }
  func.func @transform_2(%arg0: i32, %arg1: memref<8xi32, #tpu.memory_space<smem>>) -> (i32, i32, i32) {
    %c0_i32 = arith.constant 0 : i32
    %c0_i32_0 = arith.constant 0 : i32
    %c0_i32_1 = arith.constant 0 : i32
    %c0_i32_2 = arith.constant 0 : i32
    return %c0_i32, %c0_i32_0, %c0_i32_1 : i32, i32, i32
  }
  func.func @transform_3(%arg0: i32, %arg1: memref<8xi32, #tpu.memory_space<smem>>) -> (i32, i32) {
    %c0_i32 = arith.constant 0 : i32
    %c0_i32_0 = arith.constant 0 : i32
    %c0_i32_1 = arith.constant 0 : i32
    return %c0_i32, %c0_i32_0 : i32, i32
  }
  func.func @transform_4(%arg0: i32, %arg1: memref<8xi32, #tpu.memory_space<smem>>) -> (i32, i32) {
    %c0_i32 = arith.constant 0 : i32
    %c0_i32_0 = arith.constant 0 : i32
    %c0_i32_1 = arith.constant 0 : i32
    return %c0_i32, %c0_i32_0 : i32, i32
  }
  func.func @transform_5(%arg0: i32, %arg1: memref<8xi32, #tpu.memory_space<smem>>) -> (i32, i32, i32) {
    %c0_i32 = arith.constant 0 : i32
    %c0_i32_0 = arith.constant 0 : i32
    %c0_i32_1 = arith.constant 0 : i32
    %c0_i32_2 = arith.constant 0 : i32
    return %c0_i32, %c0_i32_0, %c0_i32_1 : i32, i32, i32
  }
}

</mosaic_0001>

<bundles_post_ra>
// kernel: tpu_custom_call.1
= control target key start
LH: loop header
LB: loop body
LE: loop exit
PB: predicated region body
PF: predicated region fallthrough
CT: control target
= control target key end

     0   :  { %s1237_s0 = inlined_call_operand.hbm [shape: s32[8], index: 0, kind: input, shape index: {}]   ;;  %s1238_s1 = inlined_call_operand.hbm [shape: f32[64,384], index: 1, kind: input, shape index: {}]   ;;  %s1239_s2 = inlined_call_operand.vmem [shape: f32[1,384], index: 2, kind: input, shape index: {}]   ;;  %s1240_s3 = inlined_call_operand.vmem [shape: f32[1,8,128], index: 3, kind: input, shape index: {}]   ;;  %s1241_s4 = inlined_call_operand.hbm [shape: bf16[128,384], index: 4, kind: input, shape index: {}]   ;;  %s1242_s5 = inlined_call_operand.vmem [shape: f32[1,384], index: 5, kind: input, shape index: {}]   ;;  %s1243_s6 = inlined_call_operand.hbm [shape: f32[1,8,128], index: 6, kind: output, shape index: {}]  }
   0x1   :  { %1249 = sst [smem:[#allocation29_spill]] %s1243_s6  ;;  %s711_s23 = scalar_lea.hbm %s1237_s0, 16 }
   0x2   :  { %p712_p0 = scmp.ne.s32.totalorder %s1237_s0, %s711_s23  ;;  %p715_p1 = scmp.lt.u32.totalorder %s711_s23, %s1237_s0 }
   0x4   :  { %p717_p2 = pnand %p715_p1, %p712_p0 }
   0x6   :  { %720 = shalt.err (!%p717_p2)  }
   0x7   :  { %s979_s28 = smov [#allocation5]  }
   0x8   :  { %12 = dma.hbm_to_smem %s1237_s0, 16, %s979_s28, [#allocation4] }
   0x9   :  { %957 = dma.done.wait [#allocation4], 16 }
   0xa   :  { %958 = vsyncadd [#allocation4], 4294967280 }
   0xb   :  { %14 = sfence }
   0xc   :  { %15 = vsyncpa [#allocation7], 0 }
   0xd   :  { %16 = vsyncpa [#allocation8], 0  ;;  %s980_s7 = smov [#allocation6]   ;;  %s721_s11 = scalar_lea.hbm %s1241_s4, 3072 }
   0xe   :  { %s26_s8 = sshll.u32 %s980_s7, 4  ;;  %p722_p3 = scmp.ne.s32.totalorder %s1241_s4, %s721_s11  ;;  %s27_s8 = int_to_ptr.vmem [resolvable:$true] %s26_s8 }
   0xf   :  { %p725_p4 = scmp.lt.u32.totalorder %s721_s11, %s1241_s4 }
  0x11   :  { %p727_p5 = pnand %p725_p4, %p722_p3 }
  0x13   :  { %730 = shalt.err (!%p727_p5)
}
  0x14   :  { %s731_s0 = scalar_lea.vmem %s27_s8, 3072  ;;  %p736_p7 = scmp.lt.s32.totalorder %s27_s8, %s27_s8 }
  0x15   :  { %p732_p6 = scmp.ne.s32.totalorder %s27_s8, %s731_s0  ;;  %p737_p8 = scmp.lt.s32.totalorder %s731_s0, %s731_s0 }
  0x17   :  { %p738_p9 = por %p737_p8, %p736_p7 }
  0x19   :  { %p739_p10 = pnand %p738_p9, %p732_p6 }
  0x1b   :  { %742 = shalt.err (!%p739_p10)
}
  0x1c   :  { %s981_s16 = smov 192   ;;  %s982_s17 = smov 12  }
  0x1d   :  { %32 = dma.hbm_to_vmem [thread:$0]  %s1241_s4, 3072, %s27_s8, [#allocation7], %s981_s16, %s981_s16, %s982_s17  }
  0x1e   :  { %959 = dma.done.wait [#allocation7], 3072  }
  0x1f   :  { %960 = vsyncadd [#allocation7], 4294964224  ;;  %s39_s20 = sld [smem:[#allocation5]]  ;;  %s983_s21 = smov [#allocation2]  }
  0x20   :  { %s47_s22 = sshll.u32 %s983_s21, 4  ;;  %s574_s23 = sld [smem:[#allocation5 + $0x1]]  ;;  %s1056_s22 = int_to_ptr.vmem [resolvable:$true] %s47_s22 }
  0x21   :  { %s984_s24 = smov [#allocation2 + $0x1]   ;;  %s1058_s26 = sld [smem:[#allocation5 + $0x2]] }
  0x22   :  { %s61_s25 = sshll.u32 %s984_s24, 4  ;;  %s985_s27 = smov [#allocation2 + $0x2]   ;;  %s1060_s25 = int_to_ptr.vmem [resolvable:$true] %s61_s25 }
  0x23   :  { %s75_s28 = sshll.u32 %s985_s27, 4  ;;  %s1062_s29 = sld [smem:[#allocation5 + $0x3]]  ;;  %s1064_s28 = int_to_ptr.vmem [resolvable:$true] %s75_s28 }
  0x25   :  { %s40_s4 = sshrl.u32 %s39_s20, 3  ;;  %s41_s30 = sand.u32 7, %s39_s20  }
  0x26   :  { %s42_s7 = smul.u32 24, %s40_s4  ;;  %s52_s8 = sshrl.u32 %s574_s23, 3 }
  0x27   :  { %s53_s9 = sand.u32 7, %s574_s23   ;;  %s54_s11 = smul.u32 24, %s52_s8 }
  0x28   :  { %s43_s10 = sadd.s32 %s42_s7, %s41_s30  ;;  %s66_s13 = sshrl.u32 %s1058_s26, 3 }
  0x29   :  { %s573_s12 = sshll.u32 %s43_s10, 4  ;;  %s55_s16 = sadd.s32 %s54_s11, %s53_s9 }
  0x2a   :  { %s45_s0 = scalar_lea.hbm %s1238_s1, %s573_s12  ;;  %s1073_s20 = scalar_lea.hbm %s1238_s1, 3072 }
  0x2b   :  { %s743_s17 = scalar_lea.hbm %s45_s0, 48  ;;  %p746_p12 = scmp.lt.u32.totalorder %s45_s0, %s1238_s1 }
  0x2c   :  { %p744_p11 = scmp.ne.s32.totalorder %s45_s0, %s743_s17  ;;  %p747_p13 = scmp.lt.u32.totalorder %s1073_s20, %s743_s17 }
  0x2d   :  { %p749_p1 = scmp.lt.u32.totalorder %s743_s17, %s45_s0 }
  0x2e   :  { %p748_p0 = por %p747_p13, %p746_p12 }
  0x30   :  { %p750_p2 = por %p749_p1, %p748_p0 }
  0x32   :  { %p751_p3 = pnand %p750_p2, %p744_p11 }
  0x34   :  { %754 = shalt.err (!%p751_p3)  }
  0x35   :  { %s755_s23 = scalar_lea.vmem %s1056_s22, 48  ;;  %s1082_s27 = scalar_lea.vmem %s1056_s22, 384 }
  0x36   :  { %p756_p4 = scmp.ne.s32.totalorder %s1056_s22, %s755_s23  ;;  %p760_p5 = scmp.lt.s32.totalorder %s1056_s22, %s1056_s22 }
  0x37   :  { %p761_p6 = scmp.lt.s32.totalorder %s1082_s27, %s755_s23 }
  0x39   :  { %p762_p7 = por %p761_p6, %p760_p5 }
  0x3b   :  { %p763_p8 = pnand %p762_p7, %p756_p4 }
  0x3d   :  { %766 = shalt.err (!%p763_p8)  }
  0x3e   :  { %s1244_s4 = smov 128   ;;  %s1246_s30 = smov 1  }
  0x3f   :  { %50 = dma.hbm_to_vmem [thread:$0]  %s45_s0, 48, %s1056_s22, [#allocation3], %s1244_s4, %s1244_s4, %s1246_s30 }
  0x40   :  { %s575_s7 = sshll.u32 %s55_s16, 4  ;;  %s67_s8 = sand.u32 7, %s1058_s26  }
  0x41   :  { %s57_s11 = scalar_lea.hbm %s1238_s1, %s575_s7  ;;  %s68_s12 = smul.u32 24, %s66_s13 }
  0x42   :  { %s767_s14 = scalar_lea.hbm %s57_s11, 48  ;;  %p770_p10 = scmp.lt.u32.totalorder %s57_s11, %s1238_s1 }
  0x43   :  { %p768_p9 = scmp.ne.s32.totalorder %s57_s11, %s767_s14  ;;  %p771_p11 = scmp.lt.u32.totalorder %s1073_s20, %s767_s14 }
  0x44   :  { %p773_p13 = scmp.lt.u32.totalorder %s767_s14, %s57_s11 }
  0x45   :  { %p772_p12 = por %p771_p11, %p770_p10 }
  0x47   :  { %p774_p0 = por %p773_p13, %p772_p12 }
  0x49   :  { %p775_p1 = pnand %p774_p0, %p768_p9 }
  0x4b   :  { %778 = shalt.err (!%p775_p1)  }
  0x4c   :  { %s779_s26 = scalar_lea.vmem %s1060_s25, 48  ;;  %p784_p3 = scmp.lt.s32.totalorder %s1060_s25, %s1056_s22 }
  0x4d   :  { %p780_p2 = scmp.ne.s32.totalorder %s1060_s25, %s779_s26  ;;  %p785_p4 = scmp.lt.s32.totalorder %s1082_s27, %s779_s26 }
  0x4f   :  { %p786_p5 = por %p785_p4, %p784_p3 }
  0x51   :  { %p787_p6 = pnand %p786_p5, %p780_p2 }
  0x53   :  { %790 = shalt.err (!%p787_p6)  }
  0x54   :  { %64 = dma.hbm_to_vmem [thread:$0]  %s57_s11, 48, %s1060_s25, [#allocation3 + $0x1], %s1244_s4, %s1244_s4, %s1246_s30 }
  0x55   :  { %s69_s13 = sadd.s32 %s68_s12, %s67_s8  ;;  %s80_s0 = sshrl.u32 %s1062_s29, 3 }
  0x56   :  { %s577_s16 = sshll.u32 %s69_s13, 4  ;;  %s81_s18 = sand.u32 7, %s1062_s29  }
  0x57   :  { %s71_s24 = scalar_lea.hbm %s1238_s1, %s577_s16  ;;  %s82_s23 = smul.u32 24, %s80_s0 }
  0x58   :  { %s791_s7 = scalar_lea.hbm %s71_s24, 48  ;;  %p794_p8 = scmp.lt.u32.totalorder %s71_s24, %s1238_s1 }
  0x59   :  { %p792_p7 = scmp.ne.s32.totalorder %s71_s24, %s791_s7  ;;  %p795_p9 = scmp.lt.u32.totalorder %s1073_s20, %s791_s7 }
  0x5a   :  { %p797_p11 = scmp.lt.u32.totalorder %s791_s7, %s71_s24 }
  0x5b   :  { %p796_p10 = por %p795_p9, %p794_p8 }
  0x5d   :  { %p798_p12 = por %p797_p11, %p796_p10 }
  0x5f   :  { %p799_p13 = pnand %p798_p12, %p792_p7 }
  0x61   :  { %802 = shalt.err (!%p799_p13)  }
  0x62   :  { %s803_s25 = scalar_lea.vmem %s1064_s28, 48  ;;  %p808_p1 = scmp.lt.s32.totalorder %s1064_s28, %s1056_s22 }
  0x63   :  { %p804_p0 = scmp.ne.s32.totalorder %s1064_s28, %s803_s25  ;;  %p809_p2 = scmp.lt.s32.totalorder %s1082_s27, %s803_s25 }
  0x65   :  { %p810_p3 = por %p809_p2, %p808_p1 }
  0x67   :  { %p811_p4 = pnand %p810_p3, %p804_p0 }
  0x69   :  { %814 = shalt.err (!%p811_p4)  }
  0x6a   :  { %78 = dma.hbm_to_vmem [thread:$0]  %s71_s24, 48, %s1064_s28, [#allocation3 + $0x2], %s1244_s4, %s1244_s4, %s1246_s30 }
  0x6b   :  { %s83_s29 = sadd.s32 %s82_s23, %s81_s18  ;;  %s988_s11 = smov [#allocation2 + $0x3]  }
  0x6c   :  { %s579_s8 = sshll.u32 %s83_s29, 4  ;;  %s89_s12 = sshll.u32 %s988_s11, 4  ;;  %s90_s12 = int_to_ptr.vmem [resolvable:$true] %s89_s12 }
  0x6d   :  { %s85_s17 = scalar_lea.hbm %s1238_s1, %s579_s8 }
  0x6e   :  { %s815_s26 = scalar_lea.hbm %s85_s17, 48  ;;  %p818_p6 = scmp.lt.u32.totalorder %s85_s17, %s1238_s1 }
  0x6f   :  { %p816_p5 = scmp.ne.s32.totalorder %s85_s17, %s815_s26  ;;  %p819_p7 = scmp.lt.u32.totalorder %s1073_s20, %s815_s26 }
  0x70   :  { %p821_p9 = scmp.lt.u32.totalorder %s815_s26, %s85_s17 }
  0x71   :  { %p820_p8 = por %p819_p7, %p818_p6 }
  0x73   :  { %p822_p10 = por %p821_p9, %p820_p8 }
  0x75   :  { %p823_p11 = pnand %p822_p10, %p816_p5 }
  0x77   :  { %826 = shalt.err (!%p823_p11)  }
  0x78   :  { %s827_s28 = scalar_lea.vmem %s90_s12, 48  ;;  %p832_p13 = scmp.lt.s32.totalorder %s90_s12, %s1056_s22 }
  0x79   :  { %p828_p12 = scmp.ne.s32.totalorder %s90_s12, %s827_s28  ;;  %p833_p0 = scmp.lt.s32.totalorder %s1082_s27, %s827_s28 }
  0x7b   :  { %p834_p1 = por %p833_p0, %p832_p13 }
  0x7d   :  { %p835_p2 = pnand %p834_p1, %p828_p12 }
  0x7f   :  { %838 = shalt.err (!%p835_p2)  }
  0x80   :  { %92 = dma.hbm_to_vmem [thread:$0]  %s85_s17, 48, %s90_s12, [#allocation3 + $0x3], %s1244_s4, %s1244_s4, %s1246_s30 }
  0x81   :  { %s580_s16 = sld [smem:[#allocation5 + $0x4]]  ;;  %s989_s18 = smov [#allocation2 + $0x4]  }
  0x82   :  { %s103_s19 = sshll.u32 %s989_s18, 4  ;;  %s582_s21 = sld [smem:[#allocation5 + $0x5]]  ;;  %s1138_s19 = int_to_ptr.vmem [resolvable:$true] %s103_s19 }
  0x83   :  { %s990_s24 = smov [#allocation2 + $0x5]   ;;  %s1140_s7 = sld [smem:[#allocation5 + $0x6]] }
  0x84   :  { %s117_s23 = sshll.u32 %s990_s24, 4  ;;  %s991_s9 = smov [#allocation2 + $0x6]   ;;  %s1142_s23 = int_to_ptr.vmem [resolvable:$true] %s117_s23 }
  0x85   :  { %s1144_s10 = sshll.u32 %s991_s9, 4  ;;  %s1146_s25 = sld [smem:[#allocation5 + $0x7]]  ;;  %s132_s10 = int_to_ptr.vmem [resolvable:$true] %s1144_s10 }
  0x87   :  { %s94_s29 = sshrl.u32 %s580_s16, 3  ;;  %s95_s8 = sand.u32 7, %s580_s16  }
  0x88   :  { %s96_s11 = smul.u32 24, %s94_s29  ;;  %s108_s12 = sshrl.u32 %s582_s21, 3 }
  0x89   :  { %s109_s14 = sand.u32 7, %s582_s21   ;;  %s110_s15 = smul.u32 24, %s108_s12 }
  0x8a   :  { %s97_s17 = sadd.s32 %s96_s11, %s95_s8  ;;  %s122_s26 = sshrl.u32 %s1140_s7, 3 }
  0x8b   :  { %s581_s13 = sshll.u32 %s97_s17, 4  ;;  %s111_s0 = sadd.s32 %s110_s15, %s109_s14 }
  0x8c   :  { %s99_s24 = scalar_lea.hbm %s1238_s1, %s581_s13  ;;  %s583_s4 = sshll.u32 %s111_s0, 4 }
  0x8d   :  { %s839_s9 = scalar_lea.hbm %s99_s24, 48  ;;  %p842_p4 = scmp.lt.u32.totalorder %s99_s24, %s1238_s1 }
  0x8e   :  { %p840_p3 = scmp.ne.s32.totalorder %s99_s24, %s839_s9  ;;  %p843_p5 = scmp.lt.u32.totalorder %s1073_s20, %s839_s9 }
  0x8f   :  { %p845_p7 = scmp.lt.u32.totalorder %s839_s9, %s99_s24 }
  0x90   :  { %p844_p6 = por %p843_p5, %p842_p4 }
  0x92   :  { %p846_p8 = por %p845_p7, %p844_p6 }
  0x94   :  { %p847_p9 = pnand %p846_p8, %p840_p3 }
  0x96   :  { %850 = shalt.err (!%p847_p9)  }
  0x97   :  { %s851_s16 = scalar_lea.vmem %s1138_s19, 48  ;;  %p856_p11 = scmp.lt.s32.totalorder %s1138_s19, %s1056_s22 }
  0x98   :  { %p852_p10 = scmp.ne.s32.totalorder %s1138_s19, %s851_s16  ;;  %p857_p12 = scmp.lt.s32.totalorder %s1082_s27, %s851_s16 }
  0x9a   :  { %p858_p13 = por %p857_p12, %p856_p11 }
  0x9c   :  { %p859_p0 = pnand %p858_p13, %p852_p10 }
  0x9e   :  { %862 = shalt.err (!%p859_p0)  }
  0x9f   :  { %s1250_s6 = smov 1   ;;  %s1251_s30 = smov 128  }
  0xa0   :  { %106 = dma.hbm_to_vmem [thread:$0]  %s99_s24, 48, %s1138_s19, [#allocation3 + $0x4], %s1251_s30, %s1251_s30, %s1250_s6 }
  0xa1   :  { %s113_s8 = scalar_lea.hbm %s1238_s1, %s583_s4  ;;  %s123_s11 = sand.u32 7, %s1140_s7  }
  0xa2   :  { %s863_s12 = scalar_lea.hbm %s113_s8, 48  ;;  %p866_p2 = scmp.lt.u32.totalorder %s113_s8, %s1238_s1 }
  0xa3   :  { %p864_p1 = scmp.ne.s32.totalorder %s113_s8, %s863_s12  ;;  %p867_p3 = scmp.lt.u32.totalorder %s1073_s20, %s863_s12 }
  0xa4   :  { %p869_p5 = scmp.lt.u32.totalorder %s863_s12, %s113_s8 }
  0xa5   :  { %p868_p4 = por %p867_p3, %p866_p2 }
  0xa7   :  { %p870_p6 = por %p869_p5, %p868_p4 }
  0xa9   :  { %p871_p7 = pnand %p870_p6, %p864_p1 }
  0xab   :  { %874 = shalt.err (!%p871_p7)  }
  0xac   :  { %s875_s19 = scalar_lea.vmem %s1142_s23, 48  ;;  %p880_p9 = scmp.lt.s32.totalorder %s1142_s23, %s1056_s22 }
  0xad   :  { %p876_p8 = scmp.ne.s32.totalorder %s1142_s23, %s875_s19  ;;  %p881_p10 = scmp.lt.s32.totalorder %s1082_s27, %s875_s19 }
  0xaf   :  { %p882_p11 = por %p881_p10, %p880_p9 }
  0xb1   :  { %p883_p12 = pnand %p882_p11, %p876_p8 }
  0xb3   :  { %886 = shalt.err (!%p883_p12)  }
  0xb4   :  { %120 = dma.hbm_to_vmem [thread:$0]  %s113_s8, 48, %s1142_s23, [#allocation3 + $0x5], %s1251_s30, %s1251_s30, %s1250_s6 }
  0xb5   :  { %s124_s4 = smul.u32 24, %s122_s26  ;;  %s136_s17 = sshrl.u32 %s1146_s25, 3 }
  0xb6   :  { %s137_s13 = sand.u32 7, %s1146_s25   ;;  %s138_s28 = smul.u32 24, %s136_s17 }
  0xb7   :  { %s125_s0 = sadd.s32 %s124_s4, %s123_s11 }
  0xb8   :  { %s585_s18 = sshll.u32 %s125_s0, 4  ;;  %s139_s21 = sadd.s32 %s138_s28, %s137_s13 }
  0xb9   :  { %s127_s16 = scalar_lea.hbm %s1238_s1, %s585_s18 }
  0xba   :  { %s887_s29 = scalar_lea.hbm %s127_s16, 48  ;;  %p890_p0 = scmp.lt.u32.totalorder %s127_s16, %s1238_s1 }
  0xbb   :  { %p888_p13 = scmp.ne.s32.totalorder %s127_s16, %s887_s29  ;;  %p891_p1 = scmp.lt.u32.totalorder %s1073_s20, %s887_s29 }
  0xbc   :  { %p893_p3 = scmp.lt.u32.totalorder %s887_s29, %s127_s16 }
  0xbd   :  { %p892_p2 = por %p891_p1, %p890_p0 }
  0xbf   :  { %p894_p4 = por %p893_p3, %p892_p2 }
  0xc1   :  { %p895_p5 = pnand %p894_p4, %p888_p13 }
  0xc3   :  { %898 = shalt.err (!%p895_p5)  }
  0xc4   :  { %s899_s23 = scalar_lea.vmem %s132_s10, 48  ;;  %p904_p7 = scmp.lt.s32.totalorder %s132_s10, %s1056_s22 }
  0xc5   :  { %p900_p6 = scmp.ne.s32.totalorder %s132_s10, %s899_s23  ;;  %p905_p8 = scmp.lt.s32.totalorder %s1082_s27, %s899_s23 }
  0xc7   :  { %p906_p9 = por %p905_p8, %p904_p7 }
  0xc9   :  { %p907_p10 = pnand %p906_p9, %p900_p6 }
  0xcb   :  { %910 = shalt.err (!%p907_p10)  }
  0xcc   :  { %134 = dma.hbm_to_vmem [thread:$0]  %s127_s16, 48, %s132_s10, [#allocation3 + $0x6], %s1251_s30, %s1251_s30, %s1250_s6 }
  0xcd   :  { %s587_s7 = sshll.u32 %s139_s21, 4  ;;  %s992_s25 = smov [#allocation2 + $0x7]  }
  0xce   :  { %s145_s26 = sshll.u32 %s992_s25, 4  ;;  %s141_s15 = scalar_lea.hbm %s1238_s1, %s587_s7  ;;  %s146_s26 = int_to_ptr.vmem [resolvable:$true] %s145_s26 }
  0xcf   :  { %s911_s19 = scalar_lea.hbm %s141_s15, 48  ;;  %p914_p12 = scmp.lt.u32.totalorder %s141_s15, %s1238_s1 }
  0xd0   :  { %p912_p11 = scmp.ne.s32.totalorder %s141_s15, %s911_s19  ;;  %p915_p13 = scmp.lt.u32.totalorder %s1073_s20, %s911_s19 }
  0xd1   :  { %p917_p1 = scmp.lt.u32.totalorder %s911_s19, %s141_s15 }
  0xd2   :  { %p916_p0 = por %p915_p13, %p914_p12 }
  0xd4   :  { %p918_p2 = por %p917_p1, %p916_p0 }
  0xd6   :  { %p919_p3 = pnand %p918_p2, %p912_p11 }
  0xd8   :  { %922 = shalt.err (!%p919_p3)  }
  0xd9   :  { %s923_s10 = scalar_lea.vmem %s146_s26, 48  ;;  %p928_p5 = scmp.lt.s32.totalorder %s146_s26, %s1056_s22 }
  0xda   :  { %p924_p4 = scmp.ne.s32.totalorder %s146_s26, %s923_s10  ;;  %p929_p6 = scmp.lt.s32.totalorder %s1082_s27, %s923_s10 }
  0xdc   :  { %p930_p7 = por %p929_p6, %p928_p5 }
  0xde   :  { %p931_p8 = pnand %p930_p7, %p924_p4 }
  0xe0   :  { %934 = shalt.err (!%p931_p8)  }
  0xe1   :  { %148 = dma.hbm_to_vmem [thread:$0]  %s141_s15, 48, %s146_s26, [#allocation3 + $0x7], %s1251_s30, %s1251_s30, %s1250_s6 }
  0xe2   :  { %961 = dma.done.wait [#allocation3], 48 }
  0xe3   :  { %962 = vsyncadd [#allocation3], 4294967248 }
  0xe4   :  { %963 = dma.done.wait [#allocation3 + $0x1], 48 }
  0xe5   :  { %964 = vsyncadd [#allocation3 + $0x1], 4294967248 }
  0xe6   :  { %965 = dma.done.wait [#allocation3 + $0x2], 48 }
  0xe7   :  { %966 = vsyncadd [#allocation3 + $0x2], 4294967248 }
  0xe8   :  { %967 = dma.done.wait [#allocation3 + $0x3], 48 }
  0xe9   :  { %968 = vsyncadd [#allocation3 + $0x3], 4294967248 }
  0xea   :  { %969 = dma.done.wait [#allocation3 + $0x4], 48 }
  0xeb   :  { %970 = vsyncadd [#allocation3 + $0x4], 4294967248 }
  0xec   :  { %971 = dma.done.wait [#allocation3 + $0x5], 48 }
  0xed   :  { %972 = vsyncadd [#allocation3 + $0x5], 4294967248 }
  0xee   :  { %973 = dma.done.wait [#allocation3 + $0x6], 48 }
  0xef   :  { %974 = vsyncadd [#allocation3 + $0x6], 4294967248 }
  0xf0   :  { %975 = dma.done.wait [#allocation3 + $0x7], 48 }
  0xf1   :  { %976 = vsyncadd [#allocation3 + $0x7], 4294967248  ;;  %v993_v0 = vmov 0.0   ;;  %v994_v1 = vmov 0   ;;  %vm995_vm0 = vmmov 0   ;;  %v1214_v23 = vld [vmem:[%s1240_s3] sm:$0xff]  ;;  %v171_v28 = vlaneseq }
  0xf2   :  { %631 = vmatprep.subr.bf16.mxu1 %v993_v0  ;;  %400 = vmatprep.mubr.bf16.mxu0 %v994_v1  ;;  %v669_v2 = vld [vmem:[#allocation6 + $0x4] ss:$12 sps:$4 sm:$0xff]   ;;  %v671_v3 = vld [vmem:[#allocation6] ss:$12 sps:$4 sm:$0xff]   ;;  %v672_v4 = vld [vmem:[#allocation6 + $0x1c] ss:$12 sps:$4 sm:$0xff]   ;;  %v190_v25 = vpack.c.bf16 %v1214_v23, %v1214_v23 }
  0xf3   :  { %647 = vmatprep.mubr.msk.bf16.mxu1 %vm995_vm0, %v993_v0  ;;  %368 = vmatprep.subr.bf16.mxu0 %v669_v2  ;;  %v674_v5 = vld [vmem:[#allocation6 + $0x18] ss:$12 sps:$4 sm:$0xff]   ;;  %v675_v6 = vld [vmem:[#allocation6 + $0x34] ss:$12 sps:$4 sm:$0xff]   ;;  %v677_v7 = vld [vmem:[#allocation6 + $0x30] ss:$12 sps:$4 sm:$0xff]  }
  0xf4   :  { %369 = vmatpush1.bf16.msra.mxu0 %v671_v3  ;;  %v678_v8 = vld [vmem:[#allocation6 + $0x4c] ss:$12 sps:$4 sm:$0xff]   ;;  %v690_v9 = vld [vmem:[#allocation6 + $0x8] ss:$12 sps:$4 sm:$0xff]   ;;  %v681_v11 = vld [vmem:[#allocation6 + $0x64] ss:$12 sps:$4 sm:$0xff]  }
  0xf5   :  { %370 = vmatprep.subr.bf16.mxu0 %v672_v4  ;;  %v680_v10 = vld [vmem:[#allocation6 + $0x48] ss:$12 sps:$4 sm:$0xff]   ;;  %632 = vmatpush3.bf16.msra.mxu1 %v690_v9  ;;  %v694_v12 = vld [vmem:[#allocation6 + $0x20] ss:$12 sps:$4 sm:$0xff]   ;;  %v695_v15 = vld [vmem:[#allocation6 + $0x38] ss:$12 sps:$4 sm:$0xff]  }
  0xf6   :  { %633 = vmatprep.subr.bf16.mxu1 %v993_v0  ;;  %v683_v13 = vld [vmem:[#allocation6 + $0x60] ss:$12 sps:$4 sm:$0xff]   ;;  %v684_v14 = vld [vmem:[#allocation6 + $0x7c] ss:$12 sps:$4 sm:$0xff]   ;;  %v686_v16 = vld [vmem:[#allocation6 + $0x78] ss:$12 sps:$4 sm:$0xff]  }
  0xf7   :  { %v687_v17 = vld [vmem:[#allocation6 + $0x94] ss:$12 sps:$4 sm:$0xff]   ;;  %v696_v18 = vld [vmem:[#allocation6 + $0x50] ss:$12 sps:$4 sm:$0xff]   ;;  %v691_v20 = vld [vmem:[#allocation6 + $0xac] ss:$12 sps:$4 sm:$0xff]  }
  0xf8   :  { %371 = vmatpush1.bf16.msra.mxu0 %v674_v5  ;;  %v689_v19 = vld [vmem:[#allocation6 + $0x90] ss:$12 sps:$4 sm:$0xff]   ;;  %v697_v21 = vld [vmem:[#allocation6 + $0x68] ss:$12 sps:$4 sm:$0xff]   ;;  %v698_v24 = vld [vmem:[#allocation6 + $0x80] ss:$12 sps:$4 sm:$0xff]  }
  0xf9   :  { %372 = vmatprep.subr.bf16.mxu0 %v675_v6  ;;  %634 = vmatpush3.bf16.msra.mxu1 %v694_v12  ;;  %v693_v22 = vld [vmem:[#allocation6 + $0xa8] ss:$12 sps:$4 sm:$0xff]   ;;  %v699_v26 = vld [vmem:[#allocation6 + $0x98] ss:$12 sps:$4 sm:$0xff]   ;;  %v700_v27 = vld [vmem:[#allocation6 + $0xb0] ss:$12 sps:$4 sm:$0xff]  }
  0xfa   :  { %635 = vmatprep.subr.bf16.mxu1 %v993_v0  ;;  %v172_v29 = vshrl.u32 %v171_v28, 7  ;;  %v169_v31 = vld [vmem:[%s1239_s2] sm:$0x7]  ;;  %v166_v35 = vld [vmem:[#allocation2] sm:$0xff]  ;;  %v168_v62 = vld [vmem:[#allocation2 + $0x10] sm:$0xff]  ;;  %s996_s2 = smov [#allocation9]  }
  0xfb   :  { %v223_v32 = vld [vmem:[%s1242_s5] sm:$0x7]  ;;  %s477_s5 = sshll.u32 %s996_s2, 4  ;;  %s478_s5 = int_to_ptr.vmem [resolvable:$true] %s477_s5 }
  0xfc   :  { %373 = vmatpush1.bf16.msra.mxu0 %v677_v7  ;;  %v173_v30 = vsub.s32 0, %v172_v29  ;;  %v177_v33 = vsub.s32 1, %v172_v29  ;;  %v167_v40 = vld [vmem:[#allocation2 + $0x8] sm:$0xff]  ;;  %v181_v58 = vsub.s32 2, %v172_v29  ;;  %s935_s30 = scalar_lea.vmem %s478_s5, 128  ;;  %p940_p10 = scmp.lt.s32.totalorder %s478_s5, %s478_s5 }
  0xfd   :  { %374 = vmatprep.subr.bf16.mxu0 %v678_v8  ;;  %636 = vmatpush3.bf16.msra.mxu1 %v695_v15  ;;  %p936_p9 = scmp.ne.s32.totalorder %s478_s5, %s935_s30  ;;  %p941_p11 = scmp.lt.s32.totalorder %s935_s30, %s935_s30 }
  0xfe   :  { %637 = vmatprep.subr.bf16.mxu1 %v993_v0  ;;  %v174_v34 = vrot.slane %v169_v31, %v173_v30  ;;  %v228_v36 = vrot.slane %v223_v32, %v173_v30  ;;  %v178_v37 = vrot.slane %v169_v31, %v177_v33  ;;  %v232_v38 = vrot.slane %v223_v32, %v177_v33 }
  0xff   :  { %v236_v59 = vrot.slane %v223_v32, %v181_v58  ;;  %v182_v61 = vrot.slane %v169_v31, %v181_v58  ;;  %p942_p12 = por %p941_p11, %p940_p10 }
 0x100   :  { %375 = vmatpush1.bf16.msra.mxu0 %v680_v10  ;;  %v186_v39 = vadd.f32 %v174_v34, %v166_v35  ;;  %v187_v44 = vadd.f32 %v178_v37, %v167_v40 }
 0x101   :  { %376 = vmatprep.subr.bf16.mxu0 %v681_v11  ;;  %638 = vmatpush3.bf16.msra.mxu1 %v696_v18  ;;  %v188_v1 = vadd.f32 %v182_v61, %v168_v62  ;;  %p943_p13 = pnand %p942_p12, %p936_p9 }
 0x102   :  { %639 = vmatprep.subr.bf16.mxu1 %v993_v0 }
 0x104   :  { %377 = vmatpush1.bf16.msra.mxu0 %v683_v13 }
 0x105   :  { %378 = vmatprep.subr.bf16.mxu0 %v684_v14  ;;  %640 = vmatpush3.bf16.msra.mxu1 %v697_v21 }
 0x106   :  { %641 = vmatprep.subr.bf16.mxu1 %v993_v0 }
 0x108   :  { %379 = vmatpush1.bf16.msra.mxu0 %v686_v16 }
 0x109   :  { %380 = vmatprep.subr.bf16.mxu0 %v687_v17  ;;  %642 = vmatpush3.bf16.msra.mxu1 %v698_v24 }
 0x10a   :  { %643 = vmatprep.subr.bf16.mxu1 %v993_v0 }
 0x10c   :  { %381 = vmatpush1.bf16.msra.mxu0 %v689_v19 }
 0x10d   :  { %382 = vmatprep.subr.bf16.mxu0 %v691_v20  ;;  %644 = vmatpush3.bf16.msra.mxu1 %v699_v26 }
 0x10e   :  { %645 = vmatprep.subr.bf16.mxu1 %v993_v0 }
 0x110   :  { %383 = vmatpush1.bf16.msra.mxu0 %v693_v22 }
 0x111   :  { %646 = vmatpush3.bf16.msra.mxu1 %v700_v27 }
 0x113   :  { %401 = vmatmul.mubr.bf16.vlgmr.msra.gmra.mrb[0].mxu0 %v190_v25 }
 0x114   :  { %648 = vmatmul.mubr.bf16.vlgmr.msra.gmra.mrb[0].mxu1 %v190_v25 }
 0x1e6   :  { %v402_v41 = vpop.f32.mrb[0].mxu0 }
 0x1e7   :  { %v403_v42 = vadd.f32 %v402_v41, %v228_v36  ;;  %v404_v43 = vpop.f32.mrb[1].mxu0  ;;  %v443_v51 = vpop.f32.mrb[0].mxu1 }
 0x1e8   :  { %v405_v45 = vadd.f32 %v404_v43, %v232_v38  ;;  %v406_v46 = vpop.f32.mrb[2].mxu0  ;;  %v649_v53 = vpop.f32.mrb[1].mxu1  ;;  %v444_v0 = vadd.f32 %v443_v51, %v236_v59 }
 0x1e9   :  { %v449_v47 = vadd.f32 %v403_v42, %v186_v39  ;;  %v407_v48 = vpop.f32.mrb[3].mxu0  ;;  %v446_v54 = vpop.f32.mrb[2].mxu1 }
 0x1ea   :  { %v456_v50 = vadd.f32 %v405_v45, %v187_v44  ;;  %v650_v55 = vpop.f32.mrb[3].mxu1 }
 0x1eb   :  { %v612_v49 = vmul.f32 -1.442695, %v449_v47 }
 0x1ec   :  { %v613_v52 = vmul.f32 -1.442695, %v456_v50 }
 0x1ed   :  { %701 = vpow2.f32 %v612_v49 }
 0x1ee   :  { %703 = vpow2.f32 %v613_v52 }
 0x1f7   :  { %v702_v56 = vpop.eup %701 }
 0x1f8   :  { %v453_v57 = vadd.f32 1.0, %v702_v56  ;;  %v704_v60 = vpop.eup %703 }
 0x1f9   :  { %v460_v63 = vadd.f32 1.0, %v704_v60 }
 0x1fa   :  { %705 = vrcp.f32 %v453_v57 }
 0x1fb   :  { %707 = vrcp.f32 %v460_v63 }
 0x204   :  { %v706_v2 = vpop.eup %705 }
 0x205   :  { %v463_v3 = vmul.f32 %v706_v2, %v444_v0  ;;  %v708_v5 = vpop.eup %707 }
 0x206   :  { %v466_v6 = vsub.f32 1.0, %v708_v5  ;;  %v468_v9 = vmul.f32 %v708_v5, %v1214_v23 }
 0x207   :  { %v464_v4 = vadd.f32 %v463_v3, %v188_v1 }
 0x209   :  { %709 = vtanh.f32 %v464_v4 }
 0x213   :  { %v710_v7 = vpop.eup %709 }
 0x214   :  { %v467_v8 = vmul.f32 %v710_v7, %v466_v6 }
 0x216   :  { %v469_v10 = vadd.f32 %v468_v9, %v467_v8 }
 0x218   :  { %470 = vst [vmem:[#allocation9] sm:$0xff] %v469_v10 }
 0x219   :  { %946 = shalt.err (!%p943_p13)
}
 0x21a   :  { %s1252_s28 = sld [smem:[#allocation29_spill]] }
 0x220   :  { %s947_s18 = scalar_lea.hbm %s1252_s28, 128 }
 0x221   :  { %p948_p0 = scmp.ne.s32.totalorder %s1252_s28, %s947_s18  ;;  %p951_p1 = scmp.lt.u32.totalorder %s947_s18, %s1252_s28 }
 0x223   :  { %p953_p2 = pnand %p951_p1, %p948_p0 }
 0x225   :  { %956 = shalt.err (!%p953_p2)
}
 0x226   :  { %480 = dma.vmem_to_hbm [thread:$0]  %s478_s5, 128, %s1252_s28, [#allocation8]  }
 0x227   :  { %977 = dma.done.wait [#allocation8], 128  }
 0x228   :  { %978 = vsyncadd [#allocation8], 4294967168 }
 0x229   :  { %484 = vsyncpa [#allocation7], 1 }
 0x22a   :  { %485 = vsyncpa [#allocation8], 1 }
 0x22b   :  { %486 = vsyncmov [#allocation3] }
 0x22e   :  { %s487_s14 = vpop.sfrf %486 }
 0x22f   :  { %p614_p3 = scmp.ne.s32.totalorder %s487_s14, 0 }
 0x231   :  { %491 = shalt.err (%p614_p3)  }
 0x232   :  { %493 = vsyncmov [#allocation3 + $0x1] }
 0x235   :  { %s494_s23 = vpop.sfrf %493 }
 0x236   :  { %p615_p4 = scmp.ne.s32.totalorder %s494_s23, 0 }
 0x238   :  { %498 = shalt.err (%p615_p4)  }
 0x239   :  { %500 = vsyncmov [#allocation3 + $0x2] }
 0x23c   :  { %s501_s7 = vpop.sfrf %500 }
 0x23d   :  { %p616_p5 = scmp.ne.s32.totalorder %s501_s7, 0 }
 0x23f   :  { %505 = shalt.err (%p616_p5)  }
 0x240   :  { %507 = vsyncmov [#allocation3 + $0x3] }
 0x243   :  { %s508_s25 = vpop.sfrf %507 }
 0x244   :  { %p617_p6 = scmp.ne.s32.totalorder %s508_s25, 0 }
 0x246   :  { %512 = shalt.err (%p617_p6)  }
 0x247   :  { %514 = vsyncmov [#allocation3 + $0x4] }
 0x24a   :  { %s515_s26 = vpop.sfrf %514 }
 0x24b   :  { %p618_p7 = scmp.ne.s32.totalorder %s515_s26, 0 }
 0x24d   :  { %519 = shalt.err (%p618_p7)  }
 0x24e   :  { %521 = vsyncmov [#allocation3 + $0x5] }
 0x251   :  { %s522_s8 = vpop.sfrf %521 }
 0x252   :  { %p619_p8 = scmp.ne.s32.totalorder %s522_s8, 0 }
 0x254   :  { %526 = shalt.err (%p619_p8)  }
 0x255   :  { %528 = vsyncmov [#allocation3 + $0x6] }
 0x258   :  { %s529_s11 = vpop.sfrf %528 }
 0x259   :  { %p620_p9 = scmp.ne.s32.totalorder %s529_s11, 0 }
 0x25b   :  { %533 = shalt.err (%p620_p9)  }
 0x25c   :  { %535 = vsyncmov [#allocation3 + $0x7] }
 0x25f   :  { %s536_s15 = vpop.sfrf %535 }
 0x260   :  { %p621_p10 = scmp.ne.s32.totalorder %s536_s15, 0 }
 0x262   :  { %540 = shalt.err (%p621_p10)  }

</bundles_post_ra>
